<compile_context>
chip_gen: v7x
topology: tpu7x:2x2x1
jax: 0.10.0
libtpu: 0.0.40
codegen_flags: <defaults>
</compile_context>

<pallas_src>
import functools

import jax
import jax.numpy as jnp
from jax.experimental import pallas as pl
from jax.experimental.pallas import tpu as pltpu


def _round_up(x, m):
    return ((x + m - 1) // m) * m


# ----------------------------------------------------------------------------
# Kernel: one (tile_m, tile_n) output tile, accumulated over the K grid axis.
# Weight tiles arrive already quantized to integer levels (bf16) from the
# wrapper; the 1/n rescale is fused into the finalize together with the bias.
# ----------------------------------------------------------------------------
def _quant_linear_kernel(x_ref, w_ref, b_ref, o_ref, acc_ref, *,
                         inv_n, compute_dtype):
    k_idx = pl.program_id(2)

    @pl.when(k_idx == 0)
    def _():
        acc_ref[...] = jnp.zeros_like(acc_ref)

    acc_ref[...] += jnp.dot(
        x_ref[...].astype(compute_dtype),       # VPU cast, hides under MXU slack
        w_ref[...].astype(compute_dtype),       # no-op on the bf16 path
        preferred_element_type=jnp.float32)

    @pl.when(k_idx == pl.num_programs(2) - 1)
    def _():
        acc = acc_ref[...]
        if inv_n != 1.0:                         # trace-time constant branch
            acc = acc * inv_n
        o_ref[...] = (acc + b_ref[...].astype(jnp.float32)).astype(o_ref.dtype)


# ----------------------------------------------------------------------------
# Quant_Linear forward:  y = x @ Uniform_Quantize(weight, k).T + bias
# ----------------------------------------------------------------------------
def quant_linear_forward(x, weight, bias=None, *, weight_bit=8,
                         full_precision_flag=False, out_dtype=None):
    *batch_dims, K = x.shape
    Nout, K_w = weight.shape
    assert K_w == K, (K_w, K)

    M = 1
    for d in batch_dims:
        M *= d
    x2d = x.reshape(M, K)
    out_dtype = x.dtype if out_dtype is None else out_dtype

    apply_quant = (not full_precision_flag) and weight_bit != 32

    # ---- one-time weight prep (tiny, weight-only elementwise) ---------------
    w_f32 = weight.astype(jnp.float32)
    if not apply_quant:
        w_prep, inv_n, compute_dtype = w_f32, 1.0, jnp.float32
    elif weight_bit == 1:
        # Uniform_Quantize, k == 1: sign().  +-1 / 0 are exact in bf16.
        w_prep = jnp.sign(w_f32).astype(jnp.bfloat16)
        inv_n, compute_dtype = 1.0, jnp.bfloat16
    elif weight_bit <= 8:
        # Integer levels round(w * n), rounded in f32 (exact tie behaviour) and
        # stored as bf16: exact for |level| <= 256, so the bf16 MXU path is
        # bit-exact on the weight side.  The 1/n rescale happens at finalize.
        n = float(2 ** weight_bit - 1)
        w_prep = jnp.round(w_f32 * n).astype(jnp.bfloat16)
        inv_n, compute_dtype = 1.0 / n, jnp.bfloat16
        # TODO(synk): for weight_bit <= 7 the levels also fit int8, quartering
        # (vs f32) the repeated weight HBM stream; kept bf16 (already halves it).
    else:
        # 9..31 bits: integer levels overflow bf16's exact-integer range; keep
        # the quantized weight in f32 and use the f32 MXU fallback.
        n = float(2 ** weight_bit - 1)
        w_prep, inv_n, compute_dtype = jnp.round(w_f32 * n) / n, 1.0, jnp.float32

    LANE, SUBLANE = 128, 8
    bf16_path = compute_dtype == jnp.bfloat16

    # ---- tiling --------------------------------------------------------------
    Nout_pad = _round_up(Nout, LANE)

    # M (rows): 512-row tiles for large M, exact 8-aligned tile for small M.
    tile_m_target = 512
    if M <= tile_m_target:
        tile_m = _round_up(M, SUBLANE)
        M_pad = tile_m
    else:
        tile_m = tile_m_target
        M_pad = _round_up(M, tile_m)
    m_tiles = M_pad // tile_m

    # N (out_features): biggest lane-dense tile dividing Nout_pad.  If the M
    # axis has only one tile, prefer >= 2 N tiles so both v7x TensorCores get
    # work along a "parallel" axis.
    n_cands = (512, 256, 128) if bf16_path else (256, 128)
    tile_n = LANE
    for cand in n_cands:
        if Nout_pad % cand != 0:
            continue
        if m_tiles == 1 and cand != LANE and Nout_pad // cand < 2:
            continue
        tile_n = cand
        break

    # K (contraction): whole-K when small (128-aligned for a full MXU feed when
    # K >= 64), otherwise the K tile with the least padding among 1024/512/256.
    tile_k_target = 1024 if bf16_path else 512
    if K <= tile_k_target:
        K_pad = _round_up(K, LANE if K >= 64 else SUBLANE)
        tile_k = K_pad
    else:
        k_cands = (1024, 512, 256) if bf16_path else (512, 256)
        tile_k, K_pad = None, None
        for cand in k_cands:
            kp = _round_up(K, cand)
            if K_pad is None or kp < K_pad:
                tile_k, K_pad = cand, kp

    # ---- operand prep (one-time pads; zeros contribute 0 to the dot) ---------
    w_kn = jnp.pad(w_prep.T, ((0, K_pad - K), (0, Nout_pad - Nout)))
    if bias is None:
        b_row = jnp.zeros((1, Nout_pad), jnp.float32)
    else:
        b_row = jnp.pad(bias.astype(jnp.float32),
                        (0, Nout_pad - Nout)).reshape(1, Nout_pad)
    if (M_pad, K_pad) != (M, K):
        x2d = jnp.pad(x2d, ((0, M_pad - M), (0, K_pad - K)))

    grid = (M_pad // tile_m, Nout_pad // tile_n, K_pad // tile_k)

    kern = functools.partial(_quant_linear_kernel, inv_n=inv_n,
                             compute_dtype=compute_dtype)

    # Max double-buffered footprint (bf16 path, 512x1024 x + 1024x512 w bf16,
    # 512x512 f32 out, + f32 acc scratch) ~= 7 MiB -> under every scoped VMEM
    # default (16 MiB v5e, 32 MiB v6e/v7x); no vmem_limit_bytes override needed.
    # TODO(synk): if profiling on v5e shows the weight DMA exposed behind the
    # bf16 matmul, add pipeline_mode=pl.Buffered(3) to the weight BlockSpec.
    out = pl.pallas_call(
        kern,
        out_shape=jax.ShapeDtypeStruct((M_pad, Nout_pad), out_dtype),
        grid_spec=pltpu.PrefetchScalarGridSpec(
            num_scalar_prefetch=0,
            grid=grid,
            in_specs=[
                pl.BlockSpec((tile_m, tile_k), lambda i, j, k: (i, k)),
                pl.BlockSpec((tile_k, tile_n), lambda i, j, k: (k, j)),
                pl.BlockSpec((1, tile_n), lambda i, j, k: (0, j)),
            ],
            out_specs=pl.BlockSpec((tile_m, tile_n), lambda i, j, k: (i, j)),
            scratch_shapes=[pltpu.VMEM((tile_m, tile_n), jnp.float32)],
        ),
        compiler_params=pltpu.CompilerParams(
            dimension_semantics=("parallel", "parallel", "arbitrary")),
    )(x2d, w_kn, b_row)

    out = out[:M, :Nout]
    return out.reshape(*batch_dims, Nout)


# ----------------------------------------------------------------------------
# References
# ----------------------------------------------------------------------------
def reference_forward(x, weight, bias=None, *, weight_bit=8,
                      full_precision_flag=False):
    """Exact module semantics in f32: Uniform_Quantize(weight, k) + F.linear."""
    if full_precision_flag or weight_bit == 32:
        w = weight
    elif weight_bit == 1:
        w = jnp.sign(weight)
    else:
        n = float(2 ** weight_bit - 1)
        w = jnp.round(weight * n) / n
    out = jnp.dot(x, w.T, precision=jax.lax.Precision.HIGHEST)
    if bias is not None:
        out = out + bias
    return out


def mixed_precision_reference(x, weight, bias=None, *, weight_bit=8,
                              full_precision_flag=False):
    """Mirrors the kernel's arithmetic (bf16 operands, f32 accumulate)."""
    if full_precision_flag or weight_bit == 32 or weight_bit > 8:
        return reference_forward(x, weight, bias, weight_bit=weight_bit,
                                 full_precision_flag=full_precision_flag)
    if weight_bit == 1:
        w_lvl = jnp.sign(weight.astype(jnp.float32)).astype(jnp.bfloat16)
        inv_n = 1.0
    else:
        n = float(2 ** weight_bit - 1)
        w_lvl = jnp.round(weight.astype(jnp.float32) * n).astype(jnp.bfloat16)
        inv_n = 1.0 / n
    xb = x.astype(jnp.bfloat16).astype(jnp.float32)
    wb = w_lvl.astype(jnp.float32)
    out = jnp.dot(xb, wb.T, precision=jax.lax.Precision.HIGHEST) * inv_n
    if bias is not None:
        out = out + bias
    return out


if __name__ == "__main__":
    key = jax.random.PRNGKey(0)
    kx, kw, kb = jax.random.split(key, 3)

    batch, seq, in_features, out_features = 2, 8, 32, 64

    x = jax.random.normal(kx, (batch, seq, in_features), dtype=jnp.float32)
    weight = jax.random.normal(kw, (out_features, in_features),
                               dtype=jnp.float32) * 0.1
    bias = jax.random.normal(kb, (out_features,), dtype=jnp.float32) * 0.1

    def check(out, tight_ref, loose_ref, tight_tol, loose_tol, name):
        assert jnp.allclose(out, tight_ref, atol=tight_tol, rtol=tight_tol), (
            name, "tight", float(jnp.max(jnp.abs(out - tight_ref))))
        assert jnp.allclose(out, loose_ref, atol=loose_tol, rtol=loose_tol), (
            name, "loose", float(jnp.max(jnp.abs(out - loose_ref))))

    # 4-bit uniform weight quantization (bf16 MXU path).
    out4 = jax.block_until_ready(
        quant_linear_forward(x, weight, bias, weight_bit=4))
    assert out4.shape == (batch, seq, out_features), out4.shape
    check(out4,
          mixed_precision_reference(x, weight, bias, weight_bit=4),
          reference_forward(x, weight, bias, weight_bit=4),
          tight_tol=1e-3, loose_tol=0.05, name="w4")

    # 1-bit (sign) path.
    out1 = jax.block_until_ready(
        quant_linear_forward(x, weight, bias, weight_bit=1))
    check(out1,
          mixed_precision_reference(x, weight, bias, weight_bit=1),
          reference_forward(x, weight, bias, weight_bit=1),
          tight_tol=1e-3, loose_tol=0.15, name="w1")

    # Full-precision flag path (f32 MXU fallback).
    outfp = jax.block_until_ready(
        quant_linear_forward(x, weight, bias, weight_bit=8,
                             full_precision_flag=True))
    reffp = reference_forward(x, weight, bias, weight_bit=8,
                              full_precision_flag=True)
    assert jnp.allclose(outfp, reffp, atol=2e-3, rtol=2e-3), \
        float(jnp.max(jnp.abs(outfp - reffp)))

    print("KERNEL_OK")
</pallas_src>

<mosaic_0001>
module attributes {stable_mosaic.version = 11 : i64} {
  func.func @_quant_linear_kernel(%arg0: i32, %arg1: i32, %arg2: i32, %arg3: memref<16x32xf32, #tpu.memory_space<vmem>>, %arg4: memref<32x128xbf16, #tpu.memory_space<vmem>>, %arg5: memref<1x128xf32, #tpu.memory_space<vmem>>, %arg6: memref<16x128xf32, #tpu.memory_space<vmem>>, %arg7: memref<16x128xf32, #tpu.memory_space<vmem>>) attributes {dimension_semantics = [#tpu.dimension_semantics<parallel>, #tpu.dimension_semantics<parallel>, #tpu.dimension_semantics<arbitrary>], iteration_bounds = array<i64: 1, 1, 1>, scalar_prefetch = 0 : i64, scratch_operands = 1 : i64, tpu.core_type = #tpu.core_type<tc>, window_params = [{transform_indices = @transform_0, window_bounds = array<i64: 16, 32>}, {transform_indices = @transform_1, window_bounds = array<i64: 32, 128>}, {transform_indices = @transform_2, window_bounds = array<i64: 1, 128>}, {transform_indices = @transform_3, window_bounds = array<i64: 16, 128>}]} {
    %c0_i32 = arith.constant 0 : i32
    %0 = arith.cmpi eq, %arg2, %c0_i32 : i32
    %1 = arith.extui %0 : i1 to i32
    %c0_i32_0 = arith.constant 0 : i32
    %2 = arith.cmpi ne, %1, %c0_i32_0 : i32
    scf.if %2 {
      %cst_10 = arith.constant 0.000000e+00 : f32
      %13 = vector.broadcast %cst_10 : f32 to vector<16x128xf32>
      %c0_11 = arith.constant 0 : index
      %c0_12 = arith.constant 0 : index
      %14 = vector.load %arg7[%c0_11, %c0_12] : memref<16x128xf32, #tpu.memory_space<vmem>>, vector<16x128xf32>
      tpu.vector_store %arg7[%c0_11, %c0_12], %13 {strides = array<i32>} : memref<16x128xf32, #tpu.memory_space<vmem>>, vector<16x128xf32>,
    } else {
    }
    %c0 = arith.constant 0 : index
    %c0_1 = arith.constant 0 : index
    %3 = vector.load %arg7[%c0, %c0_1] : memref<16x128xf32, #tpu.memory_space<vmem>>, vector<16x128xf32>
    %c0_2 = arith.constant 0 : index
    %c0_3 = arith.constant 0 : index
    %4 = vector.load %arg3[%c0_2, %c0_3] : memref<16x32xf32, #tpu.memory_space<vmem>>, vector<16x32xf32>
    %5 = arith.truncf %4 : vector<16x32xf32> to vector<16x32xbf16>
    %c0_4 = arith.constant 0 : index
    %c0_5 = arith.constant 0 : index
    %6 = vector.load %arg4[%c0_4, %c0_5] : memref<32x128xbf16, #tpu.memory_space<vmem>>, vector<32x128xbf16>
    %cst = arith.constant dense<0.000000e+00> : vector<16x128xf32>
    %7 = tpu.matmul %5, %6, %cst {dimension_numbers = #tpu.dot_dimension_numbers<[1], [0], [0], [1], [0, 0, 1, 1], [], []>} : vector<16x32xbf16>, vector<32x128xbf16>, vector<16x128xf32> -> vector<16x128xf32>
    %8 = arith.addf %3, %7 : vector<16x128xf32>
    %c0_6 = arith.constant 0 : index
    %c0_7 = arith.constant 0 : index
    %9 = vector.load %arg7[%c0_6, %c0_7] : memref<16x128xf32, #tpu.memory_space<vmem>>, vector<16x128xf32>
    tpu.vector_store %arg7[%c0_6, %c0_7], %8 {strides = array<i32>} : memref<16x128xf32, #tpu.memory_space<vmem>>, vector<16x128xf32>,
    %c0_i32_8 = arith.constant 0 : i32
    %10 = arith.cmpi eq, %arg2, %c0_i32_8 : i32
    %11 = arith.extui %10 : i1 to i32
    %c0_i32_9 = arith.constant 0 : i32
    %12 = arith.cmpi ne, %11, %c0_i32_9 : i32
    scf.if %12 {
      %c0_10 = arith.constant 0 : index
      %c0_11 = arith.constant 0 : index
      %13 = vector.load %arg7[%c0_10, %c0_11] : memref<16x128xf32, #tpu.memory_space<vmem>>, vector<16x128xf32>
      %cst_12 = arith.constant 0.0666666701 : f32
      %14 = vector.broadcast %cst_12 : f32 to vector<16x128xf32>
      %15 = arith.mulf %13, %14 : vector<16x128xf32>
      %c0_13 = arith.constant 0 : index
      %c0_14 = arith.constant 0 : index
      %16 = vector.load %arg5[%c0_13, %c0_14] : memref<1x128xf32, #tpu.memory_space<vmem>>, vector<1x128xf32>
      %17 = vector.broadcast %16 : vector<1x128xf32> to vector<16x128xf32>
      %18 = arith.addf %15, %17 : vector<16x128xf32>
      %c0_15 = arith.constant 0 : index
      %c0_16 = arith.constant 0 : index
      %19 = vector.load %arg6[%c0_15, %c0_16] : memref<16x128xf32, #tpu.memory_space<vmem>>, vector<16x128xf32>
      tpu.vector_store %arg6[%c0_15, %c0_16], %18 {strides = array<i32>} : memref<16x128xf32, #tpu.memory_space<vmem>>, vector<16x128xf32>,
    } else {
    }
    return
  }
  func.func @transform_0(%arg0: i32, %arg1: i32, %arg2: i32) -> (i32, i32) {
    %c0_i32 = arith.constant 0 : i32
    return %arg0, %arg2 : i32, i32
  }
  func.func @transform_1(%arg0: i32, %arg1: i32, %arg2: i32) -> (i32, i32) {
    %c0_i32 = arith.constant 0 : i32
    return %arg2, %arg1 : i32, i32
  }
  func.func @transform_2(%arg0: i32, %arg1: i32, %arg2: i32) -> (i32, i32) {
    %c0_i32 = arith.constant 0 : i32
    %c0_i32_0 = arith.constant 0 : i32
    return %c0_i32, %arg1 : i32, i32
  }
  func.func @transform_3(%arg0: i32, %arg1: i32, %arg2: i32) -> (i32, i32) {
    %c0_i32 = arith.constant 0 : i32
    return %arg0, %arg1 : i32, i32
  }
}

</mosaic_0001>

<bundles_post_ra>
// kernel: tpu_custom_call.1
= control target key start
LH: loop header
LB: loop body
LE: loop exit
PB: predicated region body
PF: predicated region fallthrough
CT: control target
= control target key end

     0   :  { %8 = vsyncpa [#allocation4], 0  ;;  %s328_s0 = inlined_call_operand.hbm [shape: f32[16,32], index: 0, kind: input, shape index: {}]   ;;  %s329_s1 = inlined_call_operand.hbm [shape: bf16[32,128], index: 1, kind: input, shape index: {}]   ;;  %s330_s2 = inlined_call_operand.vmem [shape: f32[1,128], index: 2, kind: input, shape index: {}]   ;;  %s331_s3 = inlined_call_operand.hbm [shape: f32[16,128], index: 3, kind: output, shape index: {}]  }
   0x1   :  { %9 = vsyncpa [#allocation7], 0 }
   0x2   :  { %10 = vsyncpa [#allocation5], 0  ;;  %s254_s12 = smov [#allocation3]   ;;  %s182_s16 = scalar_lea.hbm %s328_s0, 256 }
   0x3   :  { %s16_s13 = sshll.u32 %s254_s12, 4  ;;  %p183_p0 = scmp.ne.s32.totalorder %s328_s0, %s182_s16  ;;  %s17_s13 = int_to_ptr.vmem [resolvable:$true] %s16_s13 }
   0x4   :  { %p186_p1 = scmp.lt.u32.totalorder %s182_s16, %s328_s0 }
   0x6   :  { %p188_p2 = pnand %p186_p1, %p183_p0 }
   0x8   :  { %191 = shalt.err (!%p188_p2)
}
   0x9   :  { %s192_s21 = scalar_lea.vmem %s17_s13, 256  ;;  %p197_p4 = scmp.lt.s32.totalorder %s17_s13, %s17_s13 }
   0xa   :  { %p193_p3 = scmp.ne.s32.totalorder %s17_s13, %s192_s21  ;;  %p198_p5 = scmp.lt.s32.totalorder %s192_s21, %s192_s21 }
   0xc   :  { %p199_p6 = por %p198_p5, %p197_p4 }
   0xe   :  { %p200_p7 = pnand %p199_p6, %p193_p3 }
  0x10   :  { %203 = shalt.err (!%p200_p7)
}
  0x11   :  { %s255_s22 = smov 128   ;;  %s256_s23 = smov 8  }
  0x12   :  { %22 = dma.hbm_to_vmem [thread:$0]  %s328_s0, 256, %s17_s13, [#allocation4], %s255_s22, %s255_s22, %s256_s23  }
  0x13   :  { %s257_s26 = smov [#allocation6]   ;;  %s204_s30 = scalar_lea.hbm %s329_s1, 256 }
  0x14   :  { %s28_s27 = sshll.u32 %s257_s26, 4  ;;  %p205_p8 = scmp.ne.s32.totalorder %s329_s1, %s204_s30  ;;  %s29_s27 = int_to_ptr.vmem [resolvable:$true] %s28_s27 }
  0x15   :  { %p208_p9 = scmp.lt.u32.totalorder %s204_s30, %s329_s1 }
  0x17   :  { %p210_p10 = pnand %p208_p9, %p205_p8 }
  0x19   :  { %213 = shalt.err (!%p210_p10)
}
  0x1a   :  { %s214_s8 = scalar_lea.vmem %s29_s27, 256  ;;  %p219_p12 = scmp.lt.s32.totalorder %s29_s27, %s29_s27 }
  0x1b   :  { %p215_p11 = scmp.ne.s32.totalorder %s29_s27, %s214_s8  ;;  %p220_p13 = scmp.lt.s32.totalorder %s214_s8, %s214_s8 }
  0x1d   :  { %p221_p0 = por %p220_p13, %p219_p12 }
  0x1f   :  { %p222_p1 = pnand %p221_p0, %p215_p11 }
  0x21   :  { %225 = shalt.err (!%p222_p1)
}
  0x22   :  { %s258_s0 = smov 64   ;;  %s259_s9 = smov 4  }
  0x23   :  { %34 = dma.hbm_to_vmem [thread:$0]  %s329_s1, 256, %s29_s27, [#allocation7], %s258_s0, %s258_s0, %s259_s9  }
  0x24   :  { %248 = dma.done.wait [#allocation4], 256  }
  0x25   :  { %249 = vsyncadd [#allocation4], 4294967040 }
  0x26   :  { %250 = dma.done.wait [#allocation7], 256  }
  0x27   :  { %251 = vsyncadd [#allocation7], 4294967040  ;;  %v260_v0 = vmov 0.0   ;;  %vm261_vm0 = vmmov 0   ;;  %v180_v1 = vld [vmem:[#allocation6] sm:$0xff]   ;;  %v181_v2 = vld [vmem:[#allocation6 + $0x8] sm:$0xff]  }
  0x28   :  { %163 = vmatprep.subr.bf16.mxu0 %v260_v0  ;;  %167 = vmatprep.mubr.msk.bf16.mxu0 %vm261_vm0, %v260_v0  ;;  %v52_v3 = vld [vmem:[#allocation3] sm:$0xff]  ;;  %v53_v4 = vld [vmem:[#allocation3 + $0x8] sm:$0xff]  ;;  %vm71_vm1 = vcmask 261120   ;;  %s262_s13 = smov [#allocation8]  }
  0x29   :  { %164 = vmatpush3.bf16.msra.mxu0 %v180_v1  ;;  %v54_v5 = vpack.c.bf16 %v53_v4, %v52_v3  ;;  %v159_v7 = vld [vmem:[%s330_s2] ss:$0 sm:$0xff]  ;;  %s143_s14 = sshll.u32 %s262_s13, 4  ;;  %s144_s14 = int_to_ptr.vmem [resolvable:$true] %s143_s14 }
  0x2a   :  { %165 = vmatprep.subr.bf16.mxu0 %v260_v0  ;;  %s226_s15 = scalar_lea.vmem %s144_s14, 256  ;;  %p231_p3 = scmp.lt.s32.totalorder %s144_s14, %s144_s14 }
  0x2b   :  { %p227_p2 = scmp.ne.s32.totalorder %s144_s14, %s226_s15  ;;  %p232_p4 = scmp.lt.s32.totalorder %s226_s15, %s226_s15 }
  0x2d   :  { %166 = vmatpush3.bf16.msra.mxu0 %v181_v2  ;;  %p233_p5 = por %p232_p4, %p231_p3 }
  0x2f   :  { %p234_p6 = pnand %p233_p5, %p227_p2 }
  0x30   :  { %168 = vmatmul.mubr.msk.bf16.vlgmr.msra.gmra.mrb[0].mxu0 %vm71_vm1, %v54_v5 }
 0x103   :  { %v109_v6 = vpop.f32.mrb[0].mxu0 }
 0x104   :  { %v125_v8 = vmul.f32 0.06666667, %v109_v6  ;;  %v169_v9 = vpop.f32.mrb[1].mxu0 }
 0x105   :  { %v112_v10 = vpop.f32.mrb[2].mxu0 }
 0x106   :  { %v134_v11 = vadd.f32 %v159_v7, %v125_v8  ;;  %v126_v12 = vmul.f32 0.06666667, %v112_v10  ;;  %v170_v13 = vpop.f32.mrb[3].mxu0 }
 0x108   :  { %136 = vst [vmem:[#allocation8] sm:$0xff] %v134_v11  ;;  %v135_v14 = vadd.f32 %v159_v7, %v126_v12 }
 0x10a   :  { %137 = vst [vmem:[#allocation8 + $0x8] sm:$0xff] %v135_v14 }
 0x10b   :  { %237 = shalt.err (!%p234_p6)
}
 0x10c   :  { %s238_s17 = scalar_lea.hbm %s331_s3, 256 }
 0x10d   :  { %p239_p7 = scmp.ne.s32.totalorder %s331_s3, %s238_s17  ;;  %p242_p8 = scmp.lt.u32.totalorder %s238_s17, %s331_s3 }
 0x10f   :  { %p244_p9 = pnand %p242_p8, %p239_p7 }
 0x111   :  { %247 = shalt.err (!%p244_p9)
}
 0x112   :  { %149 = dma.vmem_to_hbm [thread:$0]  %s144_s14, 256, %s331_s3, [#allocation5], %s255_s22, %s255_s22, %s256_s23  }
 0x113   :  { %252 = dma.done.wait [#allocation5], 256  }
 0x114   :  { %253 = vsyncadd [#allocation5], 4294967040 }
 0x115   :  { %153 = vsyncpa [#allocation4], 1 }
 0x116   :  { %154 = vsyncpa [#allocation7], 1 }
 0x117   :  { %155 = vsyncpa [#allocation5], 1 }

</bundles_post_ra>
